<compile_context>
chip_gen: v6e
topology: v6e:2x2x1
jax: 0.10.0
libtpu: 0.0.40
codegen_flags: <defaults>
</compile_context>

<pallas_src>
import jax
import jax.numpy as jnp
import numpy as np
from jax.experimental import pallas as pl
from jax.experimental.pallas import tpu as pltpu

# Small shapes consistent with the module (embed_dim = num_heads * block_size, and
# num_heads * (seq_len // block_size) == batch so the PyTorch mask broadcast is valid).
EMBED_DIM = 32
NUM_HEADS = 2
BLOCK_SIZE = EMBED_DIM // NUM_HEADS   # 16
SEQ_LEN = 16
BATCH = 2


def _attn_kernel(x_ref, w_ref, b_ref, seg_ref, segt_ref, rep_ref, bw_ref, pack_ref, out_ref):
    """One row-tile of the problem:
       - fused bf16 QKV projection on the MXU (f32 accumulation),
       - blockwise softmax gating with no per-head loop (EUP exp + approx reciprocal,
         denominators via a segment-sum selector matmul),
       - (h,g) contraction via selector matmuls -> lane-dense packed store."""
    E = EMBED_DIM
    H = NUM_HEADS
    HH = H * H
    TN = x_ref.shape[0]                 # rows in this tile (static)
    PACK_ROWS = 128 // HH               # rows packed into one 128-lane output row

    # ---- fused q/k/v projection: one bf16 MXU matmul, f32 accumulate, f32 bias add ----
    x = x_ref[...].astype(jnp.bfloat16)
    qkv = jnp.dot(x, w_ref[...], preferred_element_type=jnp.float32) + b_ref[...]
    q = qkv[:, 0 * E:1 * E]
    k = qkv[:, 1 * E:2 * E]
    v = qkv[:, 2 * E:3 * E]

    # ---- blockwise softmax on k, collapsed (no head loop) ----
    # Subtracting the *row* max is exactly equivalent to the per-head max (the constant
    # cancels in numerator/denominator) and costs a single XLU lane-reduce.
    m = jnp.max(k, axis=-1, keepdims=True)
    e = jnp.exp(k - m)                                                      # [TN, E] f32 (EUP)
    denom = jnp.dot(e.astype(jnp.bfloat16), seg_ref[...],
                    preferred_element_type=jnp.float32)                     # [TN, H]
    r = pl.reciprocal(denom, approx=True)                                   # EUP, free slot
    r_b = jnp.dot(r.astype(jnp.bfloat16), segt_ref[...],
                  preferred_element_type=jnp.float32)                       # [TN, E] per-head bcast
    # NOTE: the registered all-ones `mask` buffer would multiply here; it is a numeric
    # no-op and is elided (the pure-JAX reference keeps it).
    s = q * (e * r_b)                                                       # gated scores, f32 VPU

    # ---- (h, g) product space: lane c = (h*H + g)*BS + x ----
    # s block-repeated H times via a one-hot selector matmul (no quadratic lane concat),
    # v tiled once along lanes (linear in H).
    s_rep = jnp.dot(s.astype(jnp.bfloat16), rep_ref[...],
                    preferred_element_type=jnp.float32)                     # [TN, HH*BS]
    v_t = jnp.concatenate([v] * H, axis=-1)                                 # [TN, HH*BS]
    prod = s_rep * v_t

    # ---- block-sum into a lane-dense 128-wide intermediate ----
    # out_tiled[n, j] = out[n, j % HH]  (wide selector keeps MXU result lane-dense).
    out_tiled = jnp.dot(prod.astype(jnp.bfloat16), bw_ref[...],
                        preferred_element_type=jnp.float32)                 # [TN, 128]

    # ---- pack rows into lanes: packed[r, n*HH + a] = out[r*PACK_ROWS + n, a] ----
    pack = pack_ref[...]                                                    # [PACK_ROWS, 128] 0/1
    rows = []
    for rr in range(TN * HH // 128):
        chunk = out_tiled[rr * PACK_ROWS:(rr + 1) * PACK_ROWS, :]
        rows.append(jnp.sum(chunk * pack, axis=0, keepdims=True))           # [1, 128]
    packed = rows[0] if len(rows) == 1 else jnp.concatenate(rows, axis=0)
    out_ref[...] = packed.astype(out_ref.dtype)                             # unmasked full-lane store


def fuse_qkv_params(wq, bq, wk, bk, wv, bv):
    """One-time parameter prep: pre-transpose + concatenate the projections.  The weight is
    cast to bf16 (MXU operand); the bias stays f32 (VPU add, keep elementwise math f32)."""
    w_qkv = jnp.concatenate([wq.T, wk.T, wv.T], axis=1).astype(jnp.bfloat16)   # [E, 3E] bf16
    b_qkv = jnp.concatenate([bq, bk, bv])[None, :].astype(jnp.float32)         # [1, 3E] f32
    return w_qkv, b_qkv


def make_selectors():
    """Host-side one-hot selector constants (built once, passed as resident kernel inputs)."""
    E, H, BS = EMBED_DIM, NUM_HEADS, BLOCK_SIZE
    HH = H * H
    lanes = np.arange(HH * BS)
    cols128 = np.arange(128)
    # segment-sum: [E, H], 1 iff lane's head block == h
    seg = (np.arange(E)[:, None] // BS == np.arange(H)[None, :]).astype(np.float32)
    # broadcast-back: [H, E]
    segt = seg.T.copy()
    # block-repeat of s into the (h,g) product space: [E, HH*BS]
    src = (lanes // (H * BS)) * BS + (lanes % BS)
    rep = (np.arange(E)[:, None] == src[None, :]).astype(np.float32)
    # wide block-sum (lane-dense result): [HH*BS, 128], 1 iff c // BS == j % HH
    bw = (lanes[:, None] // BS == (cols128[None, :] % HH)).astype(np.float32)
    # row->lane pack mask: [128//HH, 128], 1 iff n == j // HH
    pack = (np.arange(128 // HH)[:, None] == (cols128[None, :] // HH)).astype(np.float32)
    return (jnp.asarray(seg, jnp.bfloat16), jnp.asarray(segt, jnp.bfloat16),
            jnp.asarray(rep, jnp.bfloat16), jnp.asarray(bw, jnp.bfloat16),
            jnp.asarray(pack, jnp.float32))


def blockwise_sparse_attention(x, w_qkv, b_qkv, selectors):
    """x: [S, B, E].  Returns the same tensor PyTorch's forward() returns:
    shape [S*H*H // E, B, E]  (== [S, B, H, H] reinterpreted row-major)."""
    S, B, E = x.shape
    H = NUM_HEADS
    HH = H * H
    BS = BLOCK_SIZE
    N = S * B
    PACK_ROWS = 128 // HH
    assert 128 % HH == 0 and N % PACK_ROWS == 0, "demo sizing: N*H*H must pack into 128 lanes"

    # Row tile: whole problem in one step at this size; for larger N use 512-row tiles
    # ("parallel" axis -> megacore shards it; weights/selectors stay VMEM-resident).
    TN = N if N <= 512 else 512
    assert N % TN == 0 and TN % PACK_ROWS == 0
    rows_per_tile = TN * HH // 128
    total_rows = N * HH // 128

    seg, segt, rep, bw, pack = selectors
    x2 = x.reshape(N, E)

    out_packed = pl.pallas_call(
        _attn_kernel,
        out_shape=jax.ShapeDtypeStruct((total_rows, 128), jnp.float32),
        grid=(N // TN,),
        in_specs=[
            pl.BlockSpec((TN, E), lambda i: (i, 0)),              # x rows (tiled)
            pl.BlockSpec((E, 3 * E), lambda i: (0, 0)),           # fused W^T (resident)
            pl.BlockSpec((1, 3 * E), lambda i: (0, 0)),           # fused bias (resident)
            pl.BlockSpec((E, H), lambda i: (0, 0)),               # segment-sum selector
            pl.BlockSpec((H, E), lambda i: (0, 0)),               # broadcast-back selector
            pl.BlockSpec((E, HH * BS), lambda i: (0, 0)),         # block-repeat selector
            pl.BlockSpec((HH * BS, 128), lambda i: (0, 0)),       # wide block-sum selector
            pl.BlockSpec((PACK_ROWS, 128), lambda i: (0, 0)),     # row->lane pack mask
        ],
        out_specs=pl.BlockSpec((rows_per_tile, 128), lambda i: (i, 0)),
        compiler_params=pltpu.CompilerParams(
            dimension_semantics=("parallel",),
            vmem_limit_bytes=32 * 1024 * 1024,   # explicit, fits v7x's smaller VMEM with headroom
        ),
    )(x2, w_qkv, b_qkv, seg, segt, rep, bw, pack)

    # Packed flat order == (s, b, h, g) row-major -> PyTorch .view(-1, B, E)
    return out_packed.reshape(-1, B, E)


def reference(x, wq, bq, wk, bk, wv, bv, mask_buf):
    """Pure-JAX transcription of the PyTorch forward (including the all-ones mask multiply)."""
    S, B, E = x.shape
    H, BS = NUM_HEADS, BLOCK_SIZE
    q = (x @ wq.T + bq).reshape(S, B, H, BS)
    k = (x @ wk.T + bk).reshape(S, B, H, BS)
    v = (x @ wv.T + bv).reshape(S, B, H, BS)
    scores = q * jax.nn.softmax(k, axis=-1)
    mask = jnp.tile(mask_buf, (S // BS, 1, 1))          # [H*(S//BS), 1, BS]
    scores = scores * mask
    out = jnp.einsum("sbhx,sbgx->sbhg", scores, v)      # scores @ v^T
    return out.reshape(-1, B, E)


if __name__ == "__main__":
    key = jax.random.PRNGKey(0)
    kx, kwq, kbq, kwk, kbk, kwv, kbv = jax.random.split(key, 7)

    E = EMBED_DIM
    bound = 1.0 / np.sqrt(E)   # PyTorch nn.Linear default init range
    x = jax.random.normal(kx, (SEQ_LEN, BATCH, E), dtype=jnp.float32)
    wq = jax.random.uniform(kwq, (E, E), jnp.float32, -bound, bound)
    bq = jax.random.uniform(kbq, (E,), jnp.float32, -bound, bound)
    wk = jax.random.uniform(kwk, (E, E), jnp.float32, -bound, bound)
    bk = jax.random.uniform(kbk, (E,), jnp.float32, -bound, bound)
    wv = jax.random.uniform(kwv, (E, E), jnp.float32, -bound, bound)
    bv = jax.random.uniform(kbv, (E,), jnp.float32, -bound, bound)
    mask_buf = jnp.ones((NUM_HEADS, 1, BLOCK_SIZE), dtype=jnp.float32)

    # One-time parameter / constant prep (would live in the module's init in real code).
    w_qkv, b_qkv = fuse_qkv_params(wq, bq, wk, bk, wv, bv)
    selectors = make_selectors()

    out = blockwise_sparse_attention(x, w_qkv, b_qkv, selectors)
    out = jax.block_until_ready(out)

    ref = reference(x, wq, bq, wk, bk, wv, bv, mask_buf)
    # Tolerance accounts for bf16 MXU operands and the approximate EUP reciprocal.
    np.testing.assert_allclose(np.asarray(out), np.asarray(ref), rtol=3e-2, atol=3e-2)
    print("KERNEL_OK")
</pallas_src>

<mosaic_0001>
module attributes {stable_mosaic.version = 11 : i64} {
  func.func @_attn_kernel(%arg0: i32, %arg1: memref<32x32xf32, #tpu.memory_space<vmem>>, %arg2: memref<32x96xbf16, #tpu.memory_space<vmem>>, %arg3: memref<1x96xf32, #tpu.memory_space<vmem>>, %arg4: memref<32x2xbf16, #tpu.memory_space<vmem>>, %arg5: memref<2x32xbf16, #tpu.memory_space<vmem>>, %arg6: memref<32x64xbf16, #tpu.memory_space<vmem>>, %arg7: memref<64x128xbf16, #tpu.memory_space<vmem>>, %arg8: memref<32x128xf32, #tpu.memory_space<vmem>>, %arg9: memref<1x128xf32, #tpu.memory_space<vmem>>) attributes {dimension_semantics = [#tpu.dimension_semantics<parallel>], iteration_bounds = array<i64: 1>, scalar_prefetch = 0 : i64, scratch_operands = 0 : i64, tpu.core_type = #tpu.core_type<tc>, window_params = [{transform_indices = @transform_0, window_bounds = array<i64: 32, 32>}, {pipeline_mode = #tpu.pipeline_mode<synchronous>, transform_indices = @transform_1, window_bounds = array<i64: 32, 96>}, {pipeline_mode = #tpu.pipeline_mode<synchronous>, transform_indices = @transform_2, window_bounds = array<i64: 1, 96>}, {pipeline_mode = #tpu.pipeline_mode<synchronous>, transform_indices = @transform_3, window_bounds = array<i64: 32, 2>}, {pipeline_mode = #tpu.pipeline_mode<synchronous>, transform_indices = @transform_4, window_bounds = array<i64: 2, 32>}, {pipeline_mode = #tpu.pipeline_mode<synchronous>, transform_indices = @transform_5, window_bounds = array<i64: 32, 64>}, {pipeline_mode = #tpu.pipeline_mode<synchronous>, transform_indices = @transform_6, window_bounds = array<i64: 64, 128>}, {pipeline_mode = #tpu.pipeline_mode<synchronous>, transform_indices = @transform_7, window_bounds = array<i64: 32, 128>}, {transform_indices = @transform_8, window_bounds = array<i64: 1, 128>}]} {
    %c0 = arith.constant 0 : index
    %c0_0 = arith.constant 0 : index
    %0 = vector.load %arg1[%c0, %c0_0] : memref<32x32xf32, #tpu.memory_space<vmem>>, vector<32x32xf32>
    %1 = arith.truncf %0 : vector<32x32xf32> to vector<32x32xbf16>
    %c0_1 = arith.constant 0 : index
    %c0_2 = arith.constant 0 : index
    %2 = vector.load %arg2[%c0_1, %c0_2] : memref<32x96xbf16, #tpu.memory_space<vmem>>, vector<32x96xbf16>
    %cst = arith.constant dense<0.000000e+00> : vector<32x96xf32>
    %3 = tpu.matmul %1, %2, %cst {dimension_numbers = #tpu.dot_dimension_numbers<[1], [0], [0], [1], [0, 0, 1, 1], [], []>} : vector<32x32xbf16>, vector<32x96xbf16>, vector<32x96xf32> -> vector<32x96xf32>
    %c0_3 = arith.constant 0 : index
    %c0_4 = arith.constant 0 : index
    %4 = vector.load %arg3[%c0_3, %c0_4] : memref<1x96xf32, #tpu.memory_space<vmem>>, vector<1x96xf32>
    %5 = vector.broadcast %4 : vector<1x96xf32> to vector<32x96xf32>
    %6 = arith.addf %3, %5 : vector<32x96xf32>
    %7 = vector.extract_strided_slice %6 {offsets = [0, 0], sizes = [32, 32], strides = [1, 1]} : vector<32x96xf32> to vector<32x32xf32>
    %8 = vector.extract_strided_slice %6 {offsets = [0, 32], sizes = [32, 32], strides = [1, 1]} : vector<32x96xf32> to vector<32x32xf32>
    %9 = vector.extract_strided_slice %6 {offsets = [0, 64], sizes = [32, 32], strides = [1, 1]} : vector<32x96xf32> to vector<32x32xf32>
    %cst_5 = arith.constant dense<0xFF800000> : vector<32xf32>
    %10 = vector.multi_reduction <maximumf>, %8, %cst_5 [1] : vector<32x32xf32> to vector<32xf32>
    %11 = vector.shape_cast %10 : vector<32xf32> to vector<32x1xf32>
    %12 = vector.broadcast %11 : vector<32x1xf32> to vector<32x32xf32>
    %13 = arith.subf %8, %12 : vector<32x32xf32>
    %14 = math.exp %13 : vector<32x32xf32>
    %15 = arith.truncf %14 : vector<32x32xf32> to vector<32x32xbf16>
    %c0_6 = arith.constant 0 : index
    %c0_7 = arith.constant 0 : index
    %16 = vector.load %arg4[%c0_6, %c0_7] : memref<32x2xbf16, #tpu.memory_space<vmem>>, vector<32x2xbf16>
    %cst_8 = arith.constant dense<0.000000e+00> : vector<32x2xf32>
    %17 = tpu.matmul %15, %16, %cst_8 {dimension_numbers = #tpu.dot_dimension_numbers<[1], [0], [0], [1], [0, 0, 1, 1], [], []>} : vector<32x32xbf16>, vector<32x2xbf16>, vector<32x2xf32> -> vector<32x2xf32>
    %18 = tpu.reciprocal %17 {approx = true} : vector<32x2xf32> -> vector<32x2xf32>
    %19 = arith.truncf %18 : vector<32x2xf32> to vector<32x2xbf16>
    %c0_9 = arith.constant 0 : index
    %c0_10 = arith.constant 0 : index
    %20 = vector.load %arg5[%c0_9, %c0_10] : memref<2x32xbf16, #tpu.memory_space<vmem>>, vector<2x32xbf16>
    %cst_11 = arith.constant dense<0.000000e+00> : vector<32x32xf32>
    %21 = tpu.matmul %19, %20, %cst_11 {dimension_numbers = #tpu.dot_dimension_numbers<[1], [0], [0], [1], [0, 0, 1, 1], [], []>} : vector<32x2xbf16>, vector<2x32xbf16>, vector<32x32xf32> -> vector<32x32xf32>
    %22 = arith.mulf %14, %21 : vector<32x32xf32>
    %23 = arith.mulf %7, %22 : vector<32x32xf32>
    %24 = arith.truncf %23 : vector<32x32xf32> to vector<32x32xbf16>
    %c0_12 = arith.constant 0 : index
    %c0_13 = arith.constant 0 : index
    %25 = vector.load %arg6[%c0_12, %c0_13] : memref<32x64xbf16, #tpu.memory_space<vmem>>, vector<32x64xbf16>
    %cst_14 = arith.constant dense<0.000000e+00> : vector<32x64xf32>
    %26 = tpu.matmul %24, %25, %cst_14 {dimension_numbers = #tpu.dot_dimension_numbers<[1], [0], [0], [1], [0, 0, 1, 1], [], []>} : vector<32x32xbf16>, vector<32x64xbf16>, vector<32x64xf32> -> vector<32x64xf32>
    %27 = tpu.concatenate %9, %9 in 1 : vector<32x32xf32>, vector<32x32xf32> -> vector<32x64xf32>
    %28 = arith.mulf %26, %27 : vector<32x64xf32>
    %29 = arith.truncf %28 : vector<32x64xf32> to vector<32x64xbf16>
    %c0_15 = arith.constant 0 : index
    %c0_16 = arith.constant 0 : index
    %30 = vector.load %arg7[%c0_15, %c0_16] : memref<64x128xbf16, #tpu.memory_space<vmem>>, vector<64x128xbf16>
    %cst_17 = arith.constant dense<0.000000e+00> : vector<32x128xf32>
    %31 = tpu.matmul %29, %30, %cst_17 {dimension_numbers = #tpu.dot_dimension_numbers<[1], [0], [0], [1], [0, 0, 1, 1], [], []>} : vector<32x64xbf16>, vector<64x128xbf16>, vector<32x128xf32> -> vector<32x128xf32>
    %c0_18 = arith.constant 0 : index
    %c0_19 = arith.constant 0 : index
    %32 = vector.load %arg8[%c0_18, %c0_19] : memref<32x128xf32, #tpu.memory_space<vmem>>, vector<32x128xf32>
    %33 = arith.mulf %31, %32 : vector<32x128xf32>
    %cst_20 = arith.constant dense<0.000000e+00> : vector<128xf32>
    %34 = vector.multi_reduction <add>, %33, %cst_20 [0] : vector<32x128xf32> to vector<128xf32>
    %35 = vector.shape_cast %34 : vector<128xf32> to vector<1x128xf32>
    %c0_21 = arith.constant 0 : index
    %c0_22 = arith.constant 0 : index
    %36 = vector.load %arg9[%c0_21, %c0_22] : memref<1x128xf32, #tpu.memory_space<vmem>>, vector<1x128xf32>
    tpu.vector_store %arg9[%c0_21, %c0_22], %35 {strides = array<i32>} : memref<1x128xf32, #tpu.memory_space<vmem>>, vector<1x128xf32>,
    return
  }
  func.func @transform_0(%arg0: i32) -> (i32, i32) {
    %c0_i32 = arith.constant 0 : i32
    %c0_i32_0 = arith.constant 0 : i32
    return %arg0, %c0_i32 : i32, i32
  }
  func.func @transform_1(%arg0: i32) -> (i32, i32) {
    %c0_i32 = arith.constant 0 : i32
    %c0_i32_0 = arith.constant 0 : i32
    %c0_i32_1 = arith.constant 0 : i32
    return %c0_i32, %c0_i32_0 : i32, i32
  }
  func.func @transform_2(%arg0: i32) -> (i32, i32) {
    %c0_i32 = arith.constant 0 : i32
    %c0_i32_0 = arith.constant 0 : i32
    %c0_i32_1 = arith.constant 0 : i32
    return %c0_i32, %c0_i32_0 : i32, i32
  }
  func.func @transform_3(%arg0: i32) -> (i32, i32) {
    %c0_i32 = arith.constant 0 : i32
    %c0_i32_0 = arith.constant 0 : i32
    %c0_i32_1 = arith.constant 0 : i32
    return %c0_i32, %c0_i32_0 : i32, i32
  }
  func.func @transform_4(%arg0: i32) -> (i32, i32) {
    %c0_i32 = arith.constant 0 : i32
    %c0_i32_0 = arith.constant 0 : i32
    %c0_i32_1 = arith.constant 0 : i32
    return %c0_i32, %c0_i32_0 : i32, i32
  }
  func.func @transform_5(%arg0: i32) -> (i32, i32) {
    %c0_i32 = arith.constant 0 : i32
    %c0_i32_0 = arith.constant 0 : i32
    %c0_i32_1 = arith.constant 0 : i32
    return %c0_i32, %c0_i32_0 : i32, i32
  }
  func.func @transform_6(%arg0: i32) -> (i32, i32) {
    %c0_i32 = arith.constant 0 : i32
    %c0_i32_0 = arith.constant 0 : i32
    %c0_i32_1 = arith.constant 0 : i32
    return %c0_i32, %c0_i32_0 : i32, i32
  }
  func.func @transform_7(%arg0: i32) -> (i32, i32) {
    %c0_i32 = arith.constant 0 : i32
    %c0_i32_0 = arith.constant 0 : i32
    %c0_i32_1 = arith.constant 0 : i32
    return %c0_i32, %c0_i32_0 : i32, i32
  }
  func.func @transform_8(%arg0: i32) -> (i32, i32) {
    %c0_i32 = arith.constant 0 : i32
    %c0_i32_0 = arith.constant 0 : i32
    return %arg0, %c0_i32 : i32, i32
  }
}

</mosaic_0001>

<bundles_post_ra>
// kernel: tpu_custom_call.1
= control target key start
LH: loop header
LB: loop body
LE: loop exit
PB: predicated region body
PF: predicated region fallthrough
CT: control target
= control target key end

     0   :  { %13 = vsyncpa [#allocation3], 0  ;;  %s993_s0 = inlined_call_operand.hbm [shape: f32[32,32], index: 0, kind: input, shape index: {}]   ;;  %s994_s1 = inlined_call_operand.vmem [shape: bf16[32,96], index: 1, kind: input, shape index: {}]   ;;  %s995_s2 = inlined_call_operand.vmem [shape: f32[1,96], index: 2, kind: input, shape index: {}]   ;;  %s996_s3 = inlined_call_operand.vmem [shape: bf16[32,2], index: 3, kind: input, shape index: {}]   ;;  %s997_s4 = inlined_call_operand.vmem [shape: bf16[2,32], index: 4, kind: input, shape index: {}]   ;;  %s998_s5 = inlined_call_operand.hbm [shape: bf16[32,64], index: 5, kind: input, shape index: {}]   ;;  %s999_s6 = inlined_call_operand.hbm [shape: bf16[64,128], index: 6, kind: input, shape index: {}]   ;;  %s1000_s7 = inlined_call_operand.hbm [shape: f32[32,128], index: 7, kind: input, shape index: {}]   ;;  %s1001_s8 = inlined_call_operand.hbm [shape: f32[1,128], index: 8, kind: output, shape index: {}]  }
   0x1   :  { %14 = vsyncpa [#allocation6], 0 }
   0x2   :  { %15 = vsyncpa [#allocation9], 0 }
   0x3   :  { %16 = vsyncpa [#allocation4], 0  ;;  %s846_s27 = smov [#allocation5]  }
   0x4   :  { %s42_s28 = sshll.u32 %s846_s27, 4  ;;  %s43_s28 = int_to_ptr.vmem [resolvable:$true] %s42_s28 }
   0x5   :  { %s746_s29 = scalar_lea.vmem %s43_s28, 256  ;;  %p751_p1 = scmp.lt.s32.totalorder %s43_s28, %s43_s28 }
   0x6   :  { %p747_p0 = scmp.ne.s32.totalorder %s43_s28, %s746_s29  ;;  %p752_p2 = scmp.lt.s32.totalorder %s746_s29, %s746_s29 }
   0x8   :  { %p753_p3 = por %p752_p2, %p751_p1 }
   0xa   :  { %p754_p4 = pnand %p753_p3, %p747_p0 }
   0xc   :  { %757 = shalt.err (!%p754_p4)
}
   0xd   :  { %s847_s30 = smov 64   ;;  %s848_s9 = smov 4  }
   0xe   :  { %48 = dma.hbm_to_vmem [thread:$0]  %s998_s5, 256, %s43_s28, [#allocation6], %s847_s30, %s847_s30, %s848_s9  }
   0xf   :  { %s849_s12 = smov [#allocation2]  }
  0x10   :  { %s22_s13 = sshll.u32 %s849_s12, 4  ;;  %s23_s13 = int_to_ptr.vmem [resolvable:$true] %s22_s13 }
  0x11   :  { %s766_s14 = scalar_lea.vmem %s23_s13, 512  ;;  %p771_p6 = scmp.lt.s32.totalorder %s23_s13, %s23_s13 }
  0x12   :  { %p767_p5 = scmp.ne.s32.totalorder %s23_s13, %s766_s14  ;;  %p772_p7 = scmp.lt.s32.totalorder %s766_s14, %s766_s14 }
  0x14   :  { %p773_p8 = por %p772_p7, %p771_p6 }
  0x16   :  { %p774_p9 = pnand %p773_p8, %p767_p5 }
  0x18   :  { %777 = shalt.err (!%p774_p9)
}
  0x19   :  { %s850_s15 = smov 128   ;;  %s851_s16 = smov 8  }
  0x1a   :  { %28 = dma.hbm_to_vmem [thread:$0]  %s993_s0, 512, %s23_s13, [#allocation3], %s850_s15, %s850_s15, %s851_s16  }
  0x1b   :  { %s852_s19 = smov [#allocation7]   ;;  %s853_s21 = smov [#allocation8]  }
  0x1c   :  { %s54_s20 = sshll.u32 %s852_s19, 4  ;;  %s66_s5 = sshll.u32 %s853_s21, 4  ;;  %s55_s20 = int_to_ptr.vmem [resolvable:$true] %s54_s20  ;;  %s67_s5 = int_to_ptr.vmem [resolvable:$true] %s66_s5 }
  0x1d   :  { %s786_s22 = scalar_lea.vmem %s55_s20, 512  ;;  %p791_p11 = scmp.lt.s32.totalorder %s55_s20, %s55_s20 }
  0x1e   :  { %p787_p10 = scmp.ne.s32.totalorder %s55_s20, %s786_s22  ;;  %p792_p12 = scmp.lt.s32.totalorder %s786_s22, %s786_s22 }
  0x20   :  { %p793_p13 = por %p792_p12, %p791_p11 }
  0x22   :  { %p794_p0 = pnand %p793_p13, %p787_p10 }
  0x24   :  { %797 = shalt.err (!%p794_p0)
}
  0x25   :  { %60 = dma.hbm_to_vmem [thread:$0]  %s999_s6, 512, %s55_s20, [#allocation6], %s847_s30, %s847_s30, %s848_s9  }
  0x26   :  { %s806_s0 = scalar_lea.vmem %s67_s5, 512  ;;  %p811_p2 = scmp.lt.s32.totalorder %s67_s5, %s67_s5 }
  0x27   :  { %p807_p1 = scmp.ne.s32.totalorder %s67_s5, %s806_s0  ;;  %p812_p3 = scmp.lt.s32.totalorder %s806_s0, %s806_s0 }
  0x29   :  { %p813_p4 = por %p812_p3, %p811_p2 }
  0x2b   :  { %p814_p5 = pnand %p813_p4, %p807_p1 }
  0x2d   :  { %817 = shalt.err (!%p814_p5)
}
  0x2e   :  { %72 = dma.hbm_to_vmem [thread:$0]  %s1000_s7, 512, %s67_s5, [#allocation9], %s850_s15, %s850_s15, %s851_s16  }
  0x2f   :  { %838 = dma.done.wait [#allocation3], 512  }
  0x30   :  { %839 = vsyncadd [#allocation3], 4294966784 }
  0x31   :  { %840 = dma.done.wait [#allocation6], 768  }
  0x32   :  { %841 = vsyncadd [#allocation6], 4294966528 }
  0x33   :  { %842 = dma.done.wait [#allocation9], 512  }
  0x34   :  { %843 = vsyncadd [#allocation9], 4294966784  ;;  %v712_v0 = vld [vmem:[%s994_s1 + $0x8] sm:$0xff]   ;;  %v713_v1 = vld [vmem:[%s994_s1] sm:$0xff]   ;;  %vm115_vm0 = vcmask 261120   ;;  %vm171_vm1 = vcmask 523520  }
  0x35   :  { %658 = vmatprep.subr.bf16.mxu1 %v712_v0  ;;  %v86_v2 = vld [vmem:[#allocation2] sm:$0xff]  ;;  %v87_v3 = vld [vmem:[#allocation2 + $0x8] sm:$0xff]  ;;  %v88_v4 = vld [vmem:[#allocation2 + $0x10] sm:$0xff]  ;;  %vm289_vm2 = vcmask 1040384   ;;  %vm282_vm3 = vcmask 15360   ;;  %vm525_vm4 = vcmask 523264  }
  0x36   :  { %659 = vmatpush3.bf16.msra.mxu1 %v712_v0  ;;  %v90_v5 = vpack.c.bf16 %v87_v3, %v86_v2  ;;  %v89_v6 = vld [vmem:[#allocation2 + $0x18] sm:$0xff]  ;;  %v616_v8 = vld [vmem:[%s995_s2] ss:$0 sm:$0xff]  ;;  %v714_v21 = vld [vmem:[%s996_s3 + $0x8] sm:$0xff]  }
  0x37   :  { %660 = vmatprep.subr.bf16.mxu1 %v713_v1  ;;  %v91_v7 = vpack.c.bf16 %v89_v6, %v88_v4  ;;  %v715_v22 = vld [vmem:[%s996_s3] sm:$0xff]   ;;  %s854_s3 = smov 96   ;;  %v716_v59 = vld [vmem:[#allocation5 + $0x8] sm:$0xff]  }
  0x38   :  { %662 = vmatprep.mubr.msk.bf16.mxu1 %vm115_vm0, %v90_v5  ;;  %v281_v43 = vld [vmem:[%s997_s4] sm:$0x1]  ;;  %s855_s4 = smov 32   ;;  %v718_v5 = vld [vmem:[#allocation7 + $0x18] sm:$0xff]  }
  0x39   :  { %700 = vmatprep.subr.msk.bf16.mxu0 %vm289_vm2, %v281_v43  ;;  %v291_v44 = vsel %vm289_vm2, %v281_v43, 0  ;;  %v717_v60 = vld [vmem:[#allocation5] sm:$0xff]   ;;  %v581_v43 = vld [vmem:[#allocation8] sm:$0xff] }
  0x3a   :  { %661 = vmatpush3.bf16.msra.mxu1 %v713_v1  ;;  %675 = vmatpush3.bf16.msra.mxu0 %v291_v44 }
  0x3b   :  { %666 = vmatprep.subr.bf16.mxu1 %v714_v21  ;;  %688 = vmatprep.subr.bf16.mxu0 %v718_v5 }
  0x3d   :  { %663 = vmatmul.mubr.msk.bf16.vlgmr.msra.gmra.mxu1 %vm115_vm0, %v91_v7 }
  0x3e   :  { %667 = vmatpush3.bf16.msra.mxu1 %v714_v21  ;;  %v720_v21 = vld [vmem:[#allocation7 + $0x8] sm:$0xff]  }
  0x3f   :  { %668 = vmatprep.subr.bf16.mxu1 %v715_v22 }
  0x42   :  { %669 = vmatpush3.bf16.msra.mxu1 %v715_v22 }
  0x43   :  { %680 = vmatprep.subr.bf16.mxu1 %v716_v59 }
  0xfd   :  { %v664_v9 = vpop.f32.mrf.mxu1 }
  0xfe   :  { %v931_v10 = vadd.f32 %v664_v9, %v616_v8 }
  0xff   :  { %v156_v11 = vpop.f32.mrf.mxu1 }
 0x100   :  { %v933_v12 = vadd.f32 %v616_v8, %v156_v11  ;;  %v178_v13 = vsel %vm171_vm1, %v931_v10, -inf }
 0x101   :  { %179 = vmax.xlane.f32.xlu1 %v178_v13  ;;  %v665_v14 = vpop.f32.mrf.mxu1 }
 0x102   :  { %v936_v15 = vadd.f32 %v665_v14, %v616_v8  ;;  %v172_v16 = vsel %vm171_vm1, %v933_v12, -inf }
 0x103   :  { %v159_v17 = vpop.f32.mrf.mxu1  ;;  %173 = vmax.xlane.f32.xlu0 %v172_v16 }
 0x104   :  { %v939_v18 = vadd.f32 %v616_v8, %v159_v17  ;;  %v181_v19 = vsel %vm171_vm1, %v936_v15, -inf }
 0x105   :  { %182 = vmax.xlane.f32.xlu1 %v181_v19 }
 0x106   :  { %v175_v20 = vsel %vm171_vm1, %v939_v18, -inf }
 0x107   :  { %176 = vmax.xlane.f32.xlu0 %v175_v20  ;;  %v719_v20 = vld [vmem:[#allocation7 + $0x10] sm:$0xff]  }
 0x18a   :  { %v180_v23 = vpop.xlane.xlu1 %179 }
 0x18b   :  { %v186_v24 = vsub.f32 %v931_v10, %v180_v23 }
 0x18c   :  { %v174_v25 = vpop.xlane.xlu0 %173 }
 0x18d   :  { %v184_v26 = vsub.f32 %v933_v12, %v174_v25  ;;  %v192_v27 = vmul.f32 1.442695, %v186_v24 }
 0x18e   :  { %v183_v28 = vpop.xlane.xlu1 %182 }
 0x18f   :  { %v187_v29 = vsub.f32 %v936_v15, %v183_v28  ;;  %v188_v30 = vmul.f32 1.442695, %v184_v26  ;;  %722 = vpow2.f32 %v192_v27 }
 0x190   :  { %v177_v31 = vpop.xlane.xlu0 %176 }
 0x191   :  { %v194_v32 = vmul.f32 1.442695, %v187_v29  ;;  %v185_v33 = vsub.f32 %v939_v18, %v177_v31 }
 0x193   :  { %724 = vpow2.f32 %v194_v32  ;;  %v190_v34 = vmul.f32 1.442695, %v185_v33 }
 0x194   :  { %726 = vpow2.f32 %v188_v30 }
 0x195   :  { %728 = vpow2.f32 %v190_v34 }
 0x19c   :  { %v723_v35 = vpop.eup %722 }
 0x1a0   :  { %v725_v36 = vpop.eup %724 }
 0x1a1   :  { %v727_v37 = vpop.eup %726  ;;  %v197_v38 = vpack.c.bf16 %v725_v36, %v723_v35 }
 0x1a2   :  { %v729_v39 = vpop.eup %728 }
 0x1a3   :  { %206 = vrot.lane.b32.xlu1 %v197_v38, %s854_s3  ;;  %v196_v40 = vpack.c.bf16 %v729_v39, %v727_v37 }
 0x1a5   :  { %204 = vrot.lane.b32.xlu0 %v196_v40, %s854_s3 }
 0x215   :  { %v207_v42 = vpop.permute.xlu1 %206 }
 0x217   :  { %v205_v41 = vpop.permute.xlu0 %204 }
 0x218   :  { %670 = vmatprep.mubr.msk.bf16.mxu1 %vm115_vm0, %v205_v41 }
 0x219   :  { %671 = vmatmul.mubr.msk.bf16.vlgmr.msra.gmra.mxu1 %vm115_vm0, %v207_v42 }
 0x21a   :  { %681 = vmatpush3.bf16.msra.mxu1 %v716_v59 }
 0x21b   :  { %682 = vmatprep.subr.bf16.mxu1 %v717_v60 }
 0x21e   :  { %683 = vmatpush3.bf16.msra.mxu1 %v717_v60 }
 0x2d9   :  { %v672_v45 = vpop.f32.mrf.mxu1 }
 0x2db   :  { %v260_v46 = vpop.f32.mrf.mxu1 }
 0x2dc   :  { %730 = vrcp.f32 %v260_v46  ;;  %v583_v46 = vld [vmem:[#allocation8 + $0x10] sm:$0xff] }
 0x2dd   :  { %v673_v47 = vpop.f32.mrf.mxu1 }
 0x2de   :  { %732 = vrcp.f32 %v673_v47 }
 0x2df   :  { %v263_v48 = vpop.f32.mrf.mxu1 }
 0x2e0   :  { %734 = vrcp.f32 %v263_v48 }
 0x2e1   :  { %736 = vrcp.f32 %v672_v45  ;;  %v582_v45 = vld [vmem:[#allocation8 + $0x8] sm:$0xff] }
 0x2e9   :  { %v731_v49 = vpop.eup %730 }
 0x2eb   :  { %v733_v50 = vpop.eup %732 }
 0x2ed   :  { %v735_v51 = vpop.eup %734 }
 0x2ee   :  { %v737_v52 = vpop.eup %736  ;;  %v279_v53 = vpack.c.bf16 %v735_v51, %v731_v49 }
 0x2ef   :  { %v280_v54 = vpack.c.bf16 %v733_v50, %v737_v52  ;;  %v584_v50 = vld [vmem:[#allocation8 + $0x18] sm:$0xff] }
 0x2f0   :  { %676 = vmatprep.mubr.msk.bf16.mxu0 %vm282_vm3, %v279_v53 }
 0x2f1   :  { %677 = vmatmul.mubr.msk.bf16.vlgmr.msra.gmra.mxu0 %vm282_vm3, %v280_v54 }
 0x2f2   :  { %689 = vmatpush3.bf16.msra.mxu0 %v718_v5 }
 0x2f3   :  { %690 = vmatprep.subr.bf16.mxu0 %v719_v20 }
 0x2f6   :  { %691 = vmatpush3.bf16.msra.mxu0 %v719_v20 }
 0x2f7   :  { %692 = vmatprep.subr.bf16.mxu0 %v720_v21 }
 0x2fa   :  { %693 = vmatpush3.bf16.msra.mxu0 %v720_v21 }
 0x3b1   :  { %v678_v55 = vpop.f32.mrf.mxu0 }
 0x3b2   :  { %350 = vrot.lane.b32.xlu0 %v678_v55, %s855_s4 }
 0x3b3   :  { %v327_v56 = vpop.f32.mrf.mxu0 }
 0x3b4   :  { %346 = vrot.lane.b32.xlu1 %v327_v56, %s855_s4 }
 0x3b5   :  { %v679_v57 = vpop.f32.mrf.mxu0 }
 0x3b7   :  { %v330_v58 = vpop.f32.mrf.mxu0 }
 0x3b8   :  { %348 = vrot.lane.b32.xlu1 %v330_v58, %s855_s4 }
 0x3bc   :  { %352 = vrot.lane.b32.xlu1 %v679_v57, %s855_s4 }
 0x424   :  { %v351_v63 = vpop.permute.xlu0 %350 }
 0x425   :  { %v360_v1 = vmul.f32 %v723_v35, %v351_v63 }
 0x426   :  { %v347_v61 = vpop.permute.xlu1 %346 }
 0x427   :  { %v358_v62 = vmul.f32 %v727_v37, %v347_v61 }
 0x429   :  { %366 = vrot.lane.b32.xlu0 %v358_v62, %s854_s3 }
 0x42a   :  { %v349_v0 = vpop.permute.xlu1 %348 }
 0x42b   :  { %v359_v2 = vmul.f32 %v729_v39, %v349_v0 }
 0x42d   :  { %370 = vrot.lane.b32.xlu0 %v360_v1, %s854_s3  ;;  %368 = vrot.lane.b32.xlu1 %v359_v2, %s854_s3 }
 0x42e   :  { %v353_v3 = vpop.permute.xlu1 %352 }
 0x42f   :  { %v361_v4 = vmul.f32 %v725_v36, %v353_v3 }
 0x431   :  { %459 = vrot.lane.b32.xlu0 %v933_v12, %s847_s30  ;;  %372 = vrot.lane.b32.xlu1 %v361_v4, %s854_s3 }
 0x435   :  { %471 = vrot.lane.b32.xlu0 %v933_v12, %s854_s3  ;;  %461 = vrot.lane.b32.xlu1 %v939_v18, %s847_s30 }
 0x439   :  { %463 = vrot.lane.b32.xlu0 %v931_v10, %s847_s30  ;;  %473 = vrot.lane.b32.xlu1 %v939_v18, %s854_s3 }
 0x43d   :  { %475 = vrot.lane.b32.xlu0 %v931_v10, %s854_s3  ;;  %465 = vrot.lane.b32.xlu1 %v936_v15, %s847_s30  ;;  %s856_s30 = smov [#allocation10]  }
 0x43e   :  { %s605_s14 = sshll.u32 %s856_s30, 4  ;;  %s606_s14 = int_to_ptr.vmem [resolvable:$true] %s605_s14 }
 0x43f   :  { %s818_s15 = scalar_lea.vmem %s606_s14, 16  ;;  %s822_s16 = scalar_lea.vmem %s606_s14, 32 }
 0x440   :  { %p819_p6 = scmp.ne.s32.totalorder %s606_s14, %s818_s15  ;;  %p823_p7 = scmp.lt.s32.totalorder %s606_s14, %s606_s14 }
 0x441   :  { %477 = vrot.lane.b32.xlu1 %v936_v15, %s854_s3  ;;  %p824_p8 = scmp.lt.s32.totalorder %s822_s16, %s818_s15 }
 0x443   :  { %p825_p9 = por %p824_p8, %p823_p7 }
 0x445   :  { %p826_p10 = pnand %p825_p9, %p819_p6 }
 0x49b   :  { %v367_v6 = vpop.permute.xlu0 %366 }
 0x49c   :  { %v378_v8 = vmul.f32 %v367_v6, %v933_v12  ;;  %v721_v12 = vld [vmem:[#allocation7] sm:$0xff]  }
 0x49d   :  { %694 = vmatprep.subr.bf16.mxu0 %v721_v12 }
 0x49e   :  { %695 = vmatpush3.bf16.msra.mxu0 %v721_v12 }
 0x49f   :  { %v369_v7 = vpop.permute.xlu1 %368  ;;  %v371_v11 = vpop.permute.xlu0 %370 }
 0x4a0   :  { %v379_v9 = vmul.f32 %v369_v7, %v939_v18  ;;  %v380_v16 = vmul.f32 %v371_v11, %v931_v10 }
 0x4a2   :  { %v382_v13 = vpack.c.bf16 %v379_v9, %v378_v8 }
 0x4a3   :  { %v373_v14 = vpop.permute.xlu1 %372  ;;  %v460_v22 = vpop.permute.xlu0 %459 }
 0x4a4   :  { %v381_v17 = vmul.f32 %v373_v14, %v936_v15  ;;  %684 = vmatprep.mubr.msk.bf16.mxu1 %vm115_vm0, %v382_v13 }
 0x4a6   :  { %v383_v19 = vpack.c.bf16 %v381_v17, %v380_v16 }
 0x4a7   :  { %v462_v18 = vpop.permute.xlu1 %461  ;;  %v472_v10 = vpop.permute.xlu0 %471 }
 0x4a8   :  { %685 = vmatmul.mubr.msk.bf16.vlgmr.msra.gmra.mxu1 %vm115_vm0, %v383_v19  ;;  %v483_v31 = vsel %vm115_vm0, %v460_v22, %v472_v10 }
 0x4ab   :  { %v474_v23 = vpop.permute.xlu1 %473  ;;  %v464_v15 = vpop.permute.xlu0 %463 }
 0x4ac   :  { %v484_v34 = vsel %vm115_vm0, %v462_v18, %v474_v23 }
 0x4af   :  { %v466_v24 = vpop.permute.xlu1 %465  ;;  %v476_v28 = vpop.permute.xlu0 %475 }
 0x4b0   :  { %v485_v35 = vsel %vm115_vm0, %v464_v15, %v476_v28 }
 0x4b3   :  { %v478_v26 = vpop.permute.xlu1 %477 }
 0x4b4   :  { %v486_v30 = vsel %vm115_vm0, %v466_v24, %v478_v26 }
 0x568   :  { %v686_v25 = vpop.f32.mrf.mxu1 }
 0x569   :  { %v489_v38 = vmul.f32 %v686_v25, %v485_v35 }
 0x56a   :  { %v440_v27 = vpop.f32.mrf.mxu1 }
 0x56b   :  { %v487_v36 = vmul.f32 %v483_v31, %v440_v27 }
 0x56c   :  { %v687_v29 = vpop.f32.mrf.mxu1 }
 0x56d   :  { %v490_v32 = vmul.f32 %v687_v29, %v486_v30 }
 0x56e   :  { %v443_v33 = vpop.f32.mrf.mxu1 }
 0x56f   :  { %v488_v37 = vmul.f32 %v484_v34, %v443_v33  ;;  %v492_v40 = vpack.c.bf16 %v490_v32, %v489_v38 }
 0x571   :  { %v491_v39 = vpack.c.bf16 %v488_v37, %v487_v36 }
 0x573   :  { %696 = vmatprep.mubr.msk.bf16.mxu0 %vm525_vm4, %v491_v39 }
 0x574   :  { %697 = vmatmul.mubr.msk.bf16.vlgmr.msra.gmra.mxu0 %vm525_vm4, %v492_v40 }
 0x634   :  { %v698_v41 = vpop.f32.mrf.mxu0 }
 0x635   :  { %v587_v51 = vmul.f32 %v698_v41, %v583_v46 }
 0x636   :  { %v566_v42 = vpop.f32.mrf.mxu0 }
 0x637   :  { %v585_v48 = vmul.f32 %v581_v43, %v566_v42 }
 0x638   :  { %v699_v44 = vpop.f32.mrf.mxu0 }
 0x639   :  { %v588_v53 = vmul.f32 %v699_v44, %v584_v50 }
 0x63a   :  { %v569_v47 = vpop.f32.mrf.mxu0 }
 0x63b   :  { %v586_v49 = vmul.f32 %v582_v45, %v569_v47 }
 0x63d   :  { %v589_v52 = vadd.f32 %v586_v49, %v585_v48 }
 0x63f   :  { %v590_v54 = vadd.f32 %v589_v52, %v587_v51 }
 0x641   :  { %v591_v55 = vadd.f32 %v590_v54, %v588_v53 }
 0x643   :  { %v592_v56 = vrot.slane %v591_v55, 4 }
 0x645   :  { %v593_v57 = vadd.f32 %v592_v56, %v591_v55 }
 0x647   :  { %v594_v58 = vrot.slane %v593_v57, 2 }
 0x649   :  { %v595_v59 = vadd.f32 %v594_v58, %v593_v57 }
 0x64b   :  { %v596_v60 = vrot.slane %v595_v59, 1 }
 0x64d   :  { %v597_v61 = vadd.f32 %v596_v60, %v595_v59 }
 0x64f   :  { %598 = vst [vmem:[#allocation10] sm:$0x1] %v597_v61 }
 0x650   :  { %829 = shalt.err (!%p826_p10)
}
 0x651   :  { %608 = dma.vmem_to_hbm [thread:$0]  %s606_s14, 16, %s1001_s8, [#allocation4]  }
 0x652   :  { %844 = dma.done.wait [#allocation4], 16  }
 0x653   :  { %845 = vsyncadd [#allocation4], 4294967280 }
 0x654   :  { %612 = vsyncpa [#allocation3], 1 }
 0x655   :  { %613 = vsyncpa [#allocation6], 1 }
 0x656   :  { %614 = vsyncpa [#allocation9], 1 }
 0x657   :  { %615 = vsyncpa [#allocation4], 1 }

</bundles_post_ra>
